<compile_context>
chip_gen: v7x
topology: tpu7x:2x2x1
jax: 0.10.0
libtpu: 0.0.40
codegen_flags: <defaults>
</compile_context>

<pallas_src>
import functools

import jax
import jax.numpy as jnp
from jax.experimental import pallas as pl
from jax.experimental.pallas import tpu as pltpu

# Deterministic stand-ins for `self.params = [random(), random(), random()]`
PARAMS = (0.5488135039273248, 0.7151893663724195, 0.6027633760716439)


def _loss_kernel(params_ref, slab_ref, loss_ref, *, n_atoms):
    # params_ref: SMEM (3,) f32
    # slab_ref:   VMEM (A+2, B) f32  -- rows [0:A]=electronegativity (atoms on
    #                                   sublanes, batch on lanes), row A=y_pred,
    #                                   row A+1=y
    # loss_ref:   VMEM (1, 1) f32
    p0 = params_ref[0]
    p1 = params_ref[1]
    p2 = params_ref[2]

    slab = slab_ref[...]                                       # [A+2, B]
    en = slab[:n_atoms, :]                                      # [A, B]
    yp = slab[n_atoms:n_atoms + 1, :]                           # [1, B]
    yt = slab[n_atoms + 1:n_atoms + 2, :]                       # [1, B]

    mean_en = jnp.mean(en, axis=0, keepdims=True)               # [1, B] sublane reduce
    de = jnp.sum(jnp.abs(en - mean_en), axis=0, keepdims=True) * 4.0   # [1, B]

    # linear_fit: ordinary least squares y_pred ~ m * de + c
    xm = jnp.mean(de, axis=1, keepdims=True)                    # [1, 1]
    ym = jnp.mean(yp, axis=1, keepdims=True)                    # [1, 1]
    dx = de - xm
    dy = yp - ym
    sxy = jnp.sum(dx * dy, axis=1, keepdims=True)               # [1, 1]
    sxx = jnp.sum(dx * dx, axis=1, keepdims=True)               # [1, 1]
    m = sxy * pl.reciprocal(sxx, approx=False)                  # exact recip
    c = ym - m * xm

    # linear_residuals + residual penalty
    r = yp - (m * de + c)                                        # [1, B]
    residual_penalty = jnp.mean(p0 * r * r + 1.0, axis=1, keepdims=True)   # [1, 1]

    # softplus(p1 * -m, beta=p2) + 1  (torch threshold=20 behaviour)
    lin = p1 * -m
    z = p2 * lin
    big = z > 20.0
    z_safe = jnp.where(big, 0.0, z)                              # avoid inf in masked branch
    sp = jnp.where(big, lin, jnp.log1p(jnp.exp(z_safe)) / p2)
    slope_penalty = sp + 1.0                                     # [1, 1]

    # smooth_l1_loss(y_pred, y), beta=1, reduction='mean'
    d = yp - yt
    ad = jnp.abs(d)
    sl1 = jnp.mean(jnp.where(ad < 1.0, 0.5 * d * d, ad - 0.5),
                   axis=1, keepdims=True)                        # [1, 1]

    loss_ref[...] = sl1 * residual_penalty * slope_penalty


def positive_slope_linear_loss(x0, y_pred, y, params=PARAMS):
    """x0: [B, A, F] f32, y_pred: [B] f32, y: [B] f32 -> scalar f32."""
    B, A, F = x0.shape
    # One fused input slab: [A+2, B] (en column atoms-major, then y_pred, y).
    slab = jnp.concatenate(
        [
            jnp.transpose(x0[:, :, 3].astype(jnp.float32)),      # [A, B]
            y_pred.astype(jnp.float32)[None, :],                 # [1, B]
            y.astype(jnp.float32)[None, :],                      # [1, B]
        ],
        axis=0,
    )                                                            # [A+2, B]
    p = jnp.asarray(params, dtype=jnp.float32)                   # (3,)

    out = pl.pallas_call(
        functools.partial(_loss_kernel, n_atoms=A),
        out_shape=jax.ShapeDtypeStruct((1, 1), jnp.float32),
        in_specs=[
            pl.BlockSpec(memory_space=pltpu.MemorySpace.SMEM),   # params (3,)
            pl.BlockSpec(memory_space=pltpu.MemorySpace.VMEM),   # slab [A+2, B]
        ],
        out_specs=pl.BlockSpec(memory_space=pltpu.MemorySpace.VMEM),
    )(p, slab)
    return out[0, 0]


def _reference(x0, y_pred, y, params=PARAMS):
    en = x0[:, :, 3]
    mean_en = en.mean(axis=1, keepdims=True)
    de = jnp.abs(en - mean_en).sum(axis=1) * 4.0
    xm = de.mean()
    ym = y_pred.mean()
    dx = de - xm
    dy = y_pred - ym
    m = (dx * dy).sum() / (dx * dx).sum()
    c = ym - m * xm
    r = y_pred - (m * de + c)
    residual_penalty = (params[0] * r * r + 1.0).mean()
    lin = params[1] * -m
    z = params[2] * lin
    sp = jnp.where(z > 20.0, lin, jnp.log1p(jnp.exp(jnp.where(z > 20.0, 0.0, z))) / params[2])
    slope_penalty = sp + 1.0
    d = y_pred - y
    ad = jnp.abs(d)
    sl1 = jnp.where(ad < 1.0, 0.5 * d * d, ad - 0.5).mean()
    return sl1 * residual_penalty * slope_penalty


if __name__ == "__main__":
    key = jax.random.PRNGKey(0)
    k0, k1, k2 = jax.random.split(key, 3)

    B, A, F = 8, 16, 8          # batch of 8 molecules, 16 atoms, 8 features each
    x0 = jax.random.uniform(k0, (B, A, F), dtype=jnp.float32, minval=0.5, maxval=4.0)
    y_pred = jax.random.normal(k1, (B,), dtype=jnp.float32)
    y = jax.random.normal(k2, (B,), dtype=jnp.float32)

    loss = jax.block_until_ready(positive_slope_linear_loss(x0, y_pred, y))
    ref = jax.block_until_ready(_reference(x0, y_pred, y))

    assert jnp.isfinite(loss), "kernel produced non-finite loss"
    assert jnp.allclose(loss, ref, rtol=1e-5, atol=1e-5), (loss, ref)
    print("KERNEL_OK")
</pallas_src>

<mosaic_0001>
module attributes {stable_mosaic.version = 11 : i64} {
  func.func @_loss_kernel(%arg0: memref<3xf32, #tpu.memory_space<smem>>, %arg1: memref<18x8xf32, #tpu.memory_space<vmem>>, %arg2: memref<1x1xf32, #tpu.memory_space<vmem>>) attributes {dimension_semantics = [], scalar_prefetch = 0 : i64, scratch_operands = 0 : i64, tpu.core_type = #tpu.core_type<tc>} {
    %c0 = arith.constant 0 : index
    %0 = memref.load %arg0[%c0] : memref<3xf32, #tpu.memory_space<smem>>
    %c1 = arith.constant 1 : index
    %1 = memref.load %arg0[%c1] : memref<3xf32, #tpu.memory_space<smem>>
    %c2 = arith.constant 2 : index
    %2 = memref.load %arg0[%c2] : memref<3xf32, #tpu.memory_space<smem>>
    %c0_0 = arith.constant 0 : index
    %c0_1 = arith.constant 0 : index
    %3 = vector.load %arg1[%c0_0, %c0_1] : memref<18x8xf32, #tpu.memory_space<vmem>>, vector<18x8xf32>
    %4 = vector.extract_strided_slice %3 {offsets = [0, 0], sizes = [16, 8], strides = [1, 1]} : vector<18x8xf32> to vector<16x8xf32>
    %5 = vector.extract_strided_slice %3 {offsets = [16, 0], sizes = [1, 8], strides = [1, 1]} : vector<18x8xf32> to vector<1x8xf32>
    %6 = vector.extract_strided_slice %3 {offsets = [17, 0], sizes = [1, 8], strides = [1, 1]} : vector<18x8xf32> to vector<1x8xf32>
    %cst = arith.constant dense<0.000000e+00> : vector<8xf32>
    %7 = vector.multi_reduction <add>, %4, %cst [0] : vector<16x8xf32> to vector<8xf32>
    %8 = vector.shape_cast %7 : vector<8xf32> to vector<1x8xf32>
    %cst_2 = arith.constant 1.600000e+01 : f32
    %9 = vector.broadcast %cst_2 : f32 to vector<1x8xf32>
    %10 = arith.divf %8, %9 : vector<1x8xf32>
    %11 = vector.broadcast %10 : vector<1x8xf32> to vector<16x8xf32>
    %12 = arith.subf %4, %11 : vector<16x8xf32>
    %13 = math.absf %12 : vector<16x8xf32>
    %cst_3 = arith.constant dense<0.000000e+00> : vector<8xf32>
    %14 = vector.multi_reduction <add>, %13, %cst_3 [0] : vector<16x8xf32> to vector<8xf32>
    %15 = vector.shape_cast %14 : vector<8xf32> to vector<1x8xf32>
    %cst_4 = arith.constant 4.000000e+00 : f32
    %16 = vector.broadcast %cst_4 : f32 to vector<1x8xf32>
    %17 = arith.mulf %15, %16 : vector<1x8xf32>
    %cst_5 = arith.constant dense<0.000000e+00> : vector<1xf32>
    %18 = vector.multi_reduction <add>, %17, %cst_5 [1] : vector<1x8xf32> to vector<1xf32>
    %19 = vector.shape_cast %18 : vector<1xf32> to vector<1x1xf32>
    %cst_6 = arith.constant 8.000000e+00 : f32
    %20 = vector.broadcast %cst_6 : f32 to vector<1x1xf32>
    %21 = arith.divf %19, %20 : vector<1x1xf32>
    %cst_7 = arith.constant dense<0.000000e+00> : vector<1xf32>
    %22 = vector.multi_reduction <add>, %5, %cst_7 [1] : vector<1x8xf32> to vector<1xf32>
    %23 = vector.shape_cast %22 : vector<1xf32> to vector<1x1xf32>
    %cst_8 = arith.constant 8.000000e+00 : f32
    %24 = vector.broadcast %cst_8 : f32 to vector<1x1xf32>
    %25 = arith.divf %23, %24 : vector<1x1xf32>
    %26 = vector.broadcast %21 : vector<1x1xf32> to vector<1x8xf32>
    %27 = arith.subf %17, %26 : vector<1x8xf32>
    %28 = vector.broadcast %25 : vector<1x1xf32> to vector<1x8xf32>
    %29 = arith.subf %5, %28 : vector<1x8xf32>
    %30 = arith.mulf %27, %29 : vector<1x8xf32>
    %cst_9 = arith.constant dense<0.000000e+00> : vector<1xf32>
    %31 = vector.multi_reduction <add>, %30, %cst_9 [1] : vector<1x8xf32> to vector<1xf32>
    %32 = vector.shape_cast %31 : vector<1xf32> to vector<1x1xf32>
    %33 = arith.mulf %27, %27 : vector<1x8xf32>
    %cst_10 = arith.constant dense<0.000000e+00> : vector<1xf32>
    %34 = vector.multi_reduction <add>, %33, %cst_10 [1] : vector<1x8xf32> to vector<1xf32>
    %35 = vector.shape_cast %34 : vector<1xf32> to vector<1x1xf32>
    %36 = tpu.reciprocal %35 : vector<1x1xf32> -> vector<1x1xf32>
    %37 = arith.mulf %32, %36 : vector<1x1xf32>
    %38 = arith.mulf %37, %21 : vector<1x1xf32>
    %39 = arith.subf %25, %38 : vector<1x1xf32>
    %40 = vector.broadcast %37 : vector<1x1xf32> to vector<1x8xf32>
    %41 = arith.mulf %40, %17 : vector<1x8xf32>
    %42 = vector.broadcast %39 : vector<1x1xf32> to vector<1x8xf32>
    %43 = arith.addf %41, %42 : vector<1x8xf32>
    %44 = arith.subf %5, %43 : vector<1x8xf32>
    %45 = vector.broadcast %0 : f32 to vector<1x8xf32>
    %46 = arith.mulf %45, %44 : vector<1x8xf32>
    %47 = arith.mulf %46, %44 : vector<1x8xf32>
    %cst_11 = arith.constant 1.000000e+00 : f32
    %48 = vector.broadcast %cst_11 : f32 to vector<1x8xf32>
    %49 = arith.addf %47, %48 : vector<1x8xf32>
    %cst_12 = arith.constant dense<0.000000e+00> : vector<1xf32>
    %50 = vector.multi_reduction <add>, %49, %cst_12 [1] : vector<1x8xf32> to vector<1xf32>
    %51 = vector.shape_cast %50 : vector<1xf32> to vector<1x1xf32>
    %cst_13 = arith.constant 8.000000e+00 : f32
    %52 = vector.broadcast %cst_13 : f32 to vector<1x1xf32>
    %53 = arith.divf %51, %52 : vector<1x1xf32>
    %cst_14 = arith.constant 0.000000e+00 : f32
    %54 = vector.broadcast %cst_14 : f32 to vector<1x1xf32>
    %55 = arith.subf %54, %37 : vector<1x1xf32>
    %56 = vector.broadcast %1 : f32 to vector<1x1xf32>
    %57 = arith.mulf %56, %55 : vector<1x1xf32>
    %58 = vector.broadcast %2 : f32 to vector<1x1xf32>
    %59 = arith.mulf %58, %57 : vector<1x1xf32>
    %cst_15 = arith.constant 2.000000e+01 : f32
    %60 = vector.broadcast %cst_15 : f32 to vector<1x1xf32>
    %61 = arith.cmpf ogt, %59, %60 : vector<1x1xf32>
    %cst_16 = arith.constant 0.000000e+00 : f32
    %62 = vector.broadcast %cst_16 : f32 to vector<1x1xf32>
    %63 = arith.select %61, %62, %59 : vector<1x1xi1>, vector<1x1xf32>
    %64 = math.exp %63 : vector<1x1xf32>
    %65 = math.log1p %64 : vector<1x1xf32>
    %66 = vector.broadcast %2 : f32 to vector<1x1xf32>
    %67 = arith.divf %65, %66 : vector<1x1xf32>
    %68 = arith.select %61, %57, %67 : vector<1x1xi1>, vector<1x1xf32>
    %cst_17 = arith.constant 1.000000e+00 : f32
    %69 = vector.broadcast %cst_17 : f32 to vector<1x1xf32>
    %70 = arith.addf %68, %69 : vector<1x1xf32>
    %71 = arith.subf %5, %6 : vector<1x8xf32>
    %72 = math.absf %71 : vector<1x8xf32>
    %cst_18 = arith.constant 1.000000e+00 : f32
    %73 = vector.broadcast %cst_18 : f32 to vector<1x8xf32>
    %74 = arith.cmpf olt, %72, %73 : vector<1x8xf32>
    %cst_19 = arith.constant 5.000000e-01 : f32
    %75 = vector.broadcast %cst_19 : f32 to vector<1x8xf32>
    %76 = arith.mulf %75, %71 : vector<1x8xf32>
    %77 = arith.mulf %76, %71 : vector<1x8xf32>
    %cst_20 = arith.constant 5.000000e-01 : f32
    %78 = vector.broadcast %cst_20 : f32 to vector<1x8xf32>
    %79 = arith.subf %72, %78 : vector<1x8xf32>
    %80 = arith.select %74, %77, %79 : vector<1x8xi1>, vector<1x8xf32>
    %cst_21 = arith.constant dense<0.000000e+00> : vector<1xf32>
    %81 = vector.multi_reduction <add>, %80, %cst_21 [1] : vector<1x8xf32> to vector<1xf32>
    %82 = vector.shape_cast %81 : vector<1xf32> to vector<1x1xf32>
    %cst_22 = arith.constant 8.000000e+00 : f32
    %83 = vector.broadcast %cst_22 : f32 to vector<1x1xf32>
    %84 = arith.divf %82, %83 : vector<1x1xf32>
    %85 = arith.mulf %84, %53 : vector<1x1xf32>
    %86 = arith.mulf %85, %70 : vector<1x1xf32>
    %c0_23 = arith.constant 0 : index
    %c0_24 = arith.constant 0 : index
    %87 = vector.load %arg2[%c0_23, %c0_24] : memref<1x1xf32, #tpu.memory_space<vmem>>, vector<1x1xf32>
    tpu.vector_store %arg2[%c0_23, %c0_24], %86 {strides = array<i32>} : memref<1x1xf32, #tpu.memory_space<vmem>>, vector<1x1xf32>,
    return
  }
}

</mosaic_0001>

<bundles_post_ra>
// kernel: tpu_custom_call.1
= control target key start
LH: loop header
LB: loop body
LE: loop exit
PB: predicated region body
PF: predicated region fallthrough
CT: control target
= control target key end

     0   :  { %7 = vsyncpa [#allocation4], 0  ;;  %s251_s0 = inlined_call_operand.vmem [shape: f32[3], index: 0, kind: input, shape index: {}]   ;;  %s252_s1 = inlined_call_operand.vmem [shape: f32[18,8], index: 1, kind: input, shape index: {}]   ;;  %s253_s2 = inlined_call_operand.hbm [shape: f32[1,1], index: 2, kind: output, shape index: {}]  }
   0x1   :  { %8 = vsyncpa [#allocation3], 0  ;;  %s15_s11 = sshll.u32 %s251_s0, 4  ;;  %s16_s11 = int_to_ptr.vmem [resolvable:$true] %s15_s11 }
   0x2   :  { %s160_s12 = scalar_lea.vmem %s16_s11, 16  ;;  %p165_p1 = scmp.lt.s32.totalorder %s16_s11, %s16_s11 }
   0x3   :  { %p161_p0 = scmp.ne.s32.totalorder %s16_s11, %s160_s12  ;;  %p166_p2 = scmp.lt.s32.totalorder %s160_s12, %s160_s12 }
   0x5   :  { %p167_p3 = por %p166_p2, %p165_p1 }
   0x7   :  { %p168_p4 = pnand %p167_p3, %p161_p0 }
   0x9   :  { %171 = shalt.err (!%p168_p4)
}
   0xa   :  { %s198_s13 = smov [#allocation2]  }
   0xb   :  { %18 = dma.vmem_to_smem %s16_s11, 16, %s198_s13, [#allocation4]  }
   0xc   :  { %194 = dma.done.wait [#allocation4], 16  }
   0xd   :  { %195 = vsyncadd [#allocation4], 4294967280 }
   0xe   :  { %24 = sfence }
   0xf   :  { %v28_v0 = vld [vmem:[%s252_s1] sm:$0xff]  ;;  %v29_v1 = vld [vmem:[%s252_s1 + $0x8] sm:$0xff]  ;;  %vm31_vm0 = vcmask 64512   ;;  %v30_v26 = vld [vmem:[%s252_s1 + $0x10] sm:$0x3]  ;;  %vm62_vm1 = vcmask 57344  }
  0x10   :  { %v32_v2 = vsel %vm31_vm0, %v28_v0, 0.0  ;;  %v33_v3 = vsel %vm31_vm0, %v29_v1, 0.0  ;;  %v63_v28 = vsel %vm62_vm1, %v30_v26, 0.0  ;;  %v115_v39 = vrot.slane %v30_v26, 1  ;;  %s25_s1 = sld [smem:[#allocation2]]  ;;  %s147_s19 = sld [smem:[#allocation2 + $0x1]] }
  0x11   :  { %v34_v4 = vadd.f32 %v33_v3, %v32_v2  ;;  %s148_s20 = sld [smem:[#allocation2 + $0x2]]  ;;  %s199_s21 = smov [#allocation5]   ;;  %vm130_vm5 = vcmask 0  }
  0x12   :  { %v117_v40 = vsub.f32 %v30_v26, %v115_v39  ;;  %s138_s22 = sshll.u32 %s199_s21, 4  ;;  %s139_s22 = int_to_ptr.vmem [resolvable:$true] %s138_s22 }
  0x13   :  { %v35_v5 = vrot.slane %v34_v4, 4  ;;  %s172_s23 = scalar_lea.vmem %s139_s22, 16  ;;  %s176_s24 = scalar_lea.vmem %s139_s22, 32 }
  0x14   :  { %v118_v41 = vand.u32 2147483647, %v117_v40  ;;  %v120_v42 = vmul.f32 0.5, %v117_v40  ;;  %p173_p5 = scmp.ne.s32.totalorder %s139_s22, %s172_s23  ;;  %p177_p6 = scmp.lt.s32.totalorder %s139_s22, %s139_s22 }
  0x15   :  { %v36_v6 = vadd.f32 %v35_v5, %v34_v4  ;;  %p178_p7 = scmp.lt.s32.totalorder %s176_s24, %s172_s23 }
  0x16   :  { %vm119_vm2 = vcmp.lt.f32.partialorder %v118_v41, 1.0  ;;  %v121_v43 = vmul.f32 %v120_v42, %v117_v40  ;;  %v149_v44 = vadd.f32 -0.5, %v118_v41  ;;  %v84_v55 = vstv %s25_s1 }
  0x17   :  { %v37_v7 = vrot.slane %v36_v6, 2  ;;  %v93_v62 = vstv %s147_s19  ;;  %p179_p8 = por %p178_p7, %p177_p6 }
  0x18   :  { %v123_v45 = vsel %vm119_vm2, %v121_v43, %v149_v44 }
  0x19   :  { %v38_v8 = vadd.f32 %v37_v7, %v36_v6  ;;  %v124_v46 = vsel %vm62_vm1, %v123_v45, 0.0  ;;  %p180_p9 = pnand %p179_p8, %p173_p5 }
  0x1b   :  { %v39_v9 = vrot.slane %v38_v8, 1 }
  0x1d   :  { %v40_v10 = vadd.f32 %v39_v9, %v38_v8 }
  0x1f   :  { %v42_v11 = vmul.f32 0.0625, %v40_v10 }
  0x21   :  { %v43_v12 = vsub.f32 %v28_v0, %v42_v11  ;;  %v44_v13 = vsub.f32 %v29_v1, %v42_v11  ;;  %v95_v0 = vstv %s148_s20 }
  0x23   :  { %v45_v14 = vand.u32 2147483647, %v43_v12  ;;  %v46_v15 = vand.u32 2147483647, %v44_v13 }
  0x25   :  { %v47_v16 = vsel %vm31_vm0, %v45_v14, 0.0  ;;  %v48_v17 = vsel %vm31_vm0, %v46_v15, 0.0 }
  0x26   :  { %v49_v18 = vadd.f32 %v48_v17, %v47_v16 }
  0x28   :  { %v50_v19 = vrot.slane %v49_v18, 4 }
  0x2a   :  { %v51_v20 = vadd.f32 %v50_v19, %v49_v18 }
  0x2c   :  { %v52_v21 = vrot.slane %v51_v20, 2 }
  0x2e   :  { %v53_v22 = vadd.f32 %v52_v21, %v51_v20 }
  0x30   :  { %v54_v23 = vrot.slane %v53_v22, 1 }
  0x32   :  { %v55_v24 = vadd.f32 %v54_v23, %v53_v22 }
  0x34   :  { %v56_v25 = vmul.f32 4.0, %v55_v24 }
  0x36   :  { %v57_v27 = vsel %vm31_vm0, %v56_v25, 0.0 }
  0x37   :  { %58 = vadd.xlane.f32.xlu0 %v57_v27 }
  0x3b   :  { %64 = vadd.xlane.f32.xlu0 %v63_v28 }
  0xc4   :  { %v59_v29 = vpop.xlane.xlu0 %58 }
  0xc5   :  { %v61_v30 = vmul.f32 0.125, %v59_v29 }
  0xc7   :  { %v67_v31 = vsub.f32 %v56_v25, %v61_v30 }
  0xc8   :  { %v65_v32 = vpop.xlane.xlu0 %64 }
  0xc9   :  { %v66_v33 = vmul.f32 0.125, %v65_v32  ;;  %v73_v34 = vmul.f32 %v67_v31, %v67_v31 }
  0xcb   :  { %v68_v35 = vsub.f32 %v30_v26, %v66_v33  ;;  %v74_v36 = vsel %vm31_vm0, %v73_v34, 0.0 }
  0xcc   :  { %75 = vadd.xlane.f32.xlu1 %v74_v36 }
  0xcd   :  { %v69_v37 = vmul.f32 %v68_v35, %v67_v31 }
  0xcf   :  { %v70_v38 = vsel %vm62_vm1, %v69_v37, 0.0 }
  0xd0   :  { %71 = vadd.xlane.f32.xlu1 %v70_v38 }
  0xd4   :  { %125 = vadd.xlane.f32.xlu1 %v124_v46 }
 0x159   :  { %v76_v47 = vpop.xlane.xlu1 %75 }
 0x15a   :  { %152 = vrcp.f32 %v76_v47 }
 0x15d   :  { %v72_v49 = vpop.xlane.xlu1 %71 }
 0x161   :  { %v126_v14 = vpop.xlane.xlu1 %125 }
 0x162   :  { %v127_v16 = vmul.f32 0.125, %v126_v14 }
 0x164   :  { %v153_v48 = vpop.eup %152 }
 0x165   :  { %v78_v50 = vmul.f32 %v153_v48, %v72_v49 }
 0x167   :  { %v79_v51 = vmul.f32 %v78_v50, %v61_v30  ;;  %v81_v53 = vmul.f32 %v78_v50, %v56_v25  ;;  %v92_v61 = vsub.f32 0.0, %v78_v50 }
 0x169   :  { %v80_v52 = vsub.f32 %v66_v33, %v79_v51  ;;  %v94_v63 = vmul.f32 %v93_v62, %v92_v61 }
 0x16b   :  { %v82_v54 = vadd.f32 %v81_v53, %v80_v52  ;;  %v96_v1 = vmul.f32 %v95_v0, %v94_v63 }
 0x16d   :  { %v83_v56 = vsub.f32 %v30_v26, %v82_v54  ;;  %vm97_vm3 = vcmp.gt.f32.partialorder %v96_v1, 20.0 }
 0x16e   :  { %v98_v2 = vsel %vm97_vm3, 0.0, %v96_v1 }
 0x16f   :  { %v85_v57 = vmul.f32 %v84_v55, %v83_v56  ;;  %v99_v3 = vmul.f32 1.442695, %v98_v2 }
 0x171   :  { %v86_v58 = vmul.f32 %v85_v57, %v83_v56  ;;  %154 = vpow2.f32 %v99_v3 }
 0x173   :  { %v87_v59 = vadd.f32 1.0, %v86_v58 }
 0x175   :  { %v88_v60 = vsel %vm62_vm1, %v87_v59, 0.0 }
 0x176   :  { %89 = vadd.xlane.f32.xlu0 %v88_v60 }
 0x17b   :  { %v155_v4 = vpop.eup %154 }
 0x17c   :  { %v101_v5 = vadd.f32 1.0, %v155_v4  ;;  %v104_v6 = vmul.f32 -0.5, %v155_v4  ;;  %v107_v9 = vand.u32 2147483647, %v155_v4 }
 0x17e   :  { %156 = vlog2.f32 %v101_v5  ;;  %v105_v8 = vadd.f32 1.0, %v104_v6  ;;  %vm108_vm4 = vcmp.lt.f32.partialorder %v107_v9, 0.0004427343 }
 0x17f   :  { %158 = vrcp.f32 %v95_v0 }
 0x180   :  { %v106_v11 = vmul.f32 %v155_v4, %v105_v8 }
 0x188   :  { %v157_v7 = vpop.eup %156 }
 0x189   :  { %v103_v10 = vmul.f32 0.6931472, %v157_v7  ;;  %v159_v12 = vpop.eup %158 }
 0x18b   :  { %v109_v13 = vsel %vm108_vm4, %v106_v11, %v103_v10 }
 0x18c   :  { %v111_v15 = vmul.f32 %v159_v12, %v109_v13 }
 0x18e   :  { %v112_v18 = vsel %vm97_vm3, %v94_v63, %v111_v15 }
 0x18f   :  { %v113_v21 = vadd.f32 1.0, %v112_v18 }
 0x203   :  { %v90_v17 = vpop.xlane.xlu0 %89 }
 0x204   :  { %v91_v19 = vmul.f32 0.125, %v90_v17 }
 0x206   :  { %v128_v20 = vmul.f32 %v127_v16, %v91_v19 }
 0x208   :  { %v129_v22 = vmul.f32 %v128_v20, %v113_v21 }
 0x20a   :  { %131 = vst.msk [vmem:[#allocation5] sm:$0x1] %vm130_vm5, %v129_v22 }
 0x20b   :  { %183 = shalt.err (!%p180_p9)
}
 0x20c   :  { %s184_s27 = scalar_lea.hbm %s253_s2, 16 }
 0x20d   :  { %p185_p10 = scmp.ne.s32.totalorder %s253_s2, %s184_s27  ;;  %p188_p11 = scmp.lt.u32.totalorder %s184_s27, %s253_s2 }
 0x20f   :  { %p190_p12 = pnand %p188_p11, %p185_p10 }
 0x211   :  { %193 = shalt.err (!%p190_p12)
}
 0x212   :  { %141 = dma.vmem_to_hbm [thread:$0]  %s139_s22, 16, %s253_s2, [#allocation3]  }
 0x213   :  { %196 = dma.done.wait [#allocation3], 16  }
 0x214   :  { %197 = vsyncadd [#allocation3], 4294967280 }
 0x215   :  { %145 = vsyncpa [#allocation3], 1 }
 0x216   :  { %146 = vsyncpa [#allocation4], 1 }

</bundles_post_ra>
